<compile_context>
chip_gen: v7x
topology: tpu7x:2x2x1
jax: 0.10.0
libtpu: 0.0.40
codegen_flags: <defaults>
</compile_context>

<pallas_src>
import jax
import jax.numpy as jnp
from jax import lax
from jax.experimental import pallas as pl
from jax.experimental.pallas import tpu as pltpu


_TILE_M_MAX = 1024                     # rows per grid step (multiple of 8)
_TILE_VMEM_BUDGET = 16 * 1024 * 1024   # conservative per-call working-set budget
_VMEM_LIMIT_BYTES = 48 * 1024 * 1024   # > default scoped limit, < v7x's 64 MiB physical VMEM


def _round_up(x, m):
    return (x + m - 1) // m * m


def _tile_bytes(tile_m, k_pad, c_pad):
    # double-buffered bf16 patch stream + double-buffered f32 response/out tile
    # + resident bf16 weight block + small per-channel operands.
    return (2 * tile_m * k_pad * 2
            + 2 * tile_m * c_pad * 4
            + 2 * k_pad * c_pad * 2
            + 8 * c_pad * 4)


def _pick_tile_m(m, k_pad, c_pad, max_tile_m=None):
    tile = _TILE_M_MAX if max_tile_m is None else max(8, (max_tile_m // 8) * 8)
    while tile > 8 and _tile_bytes(tile, k_pad, c_pad) > _TILE_VMEM_BUDGET:
        tile = max(8, (tile // 2) // 8 * 8)
    return max(8, min(tile, _round_up(m, 8)))


def _im2col_nhwc(x, k, stride, padding):
    """x: (N, H, W, C) -> patches (N*H_out*W_out, k*k*C), K ordered (kh, kw, c)."""
    N, H, W, C = x.shape
    H_out = (H + 2 * padding - k) // stride + 1
    W_out = (W + 2 * padding - k) // stride + 1
    if k == 1 and padding == 0 and stride == 1:
        return x.reshape(N * H * W, C), H_out, W_out       # 1x1 conv: no duplication at all
    xp = jnp.pad(x, ((0, 0), (padding, padding), (padding, padding), (0, 0)))
    cols = []
    for kh in range(k):
        for kw in range(k):
            cols.append(xp[:, kh:kh + stride * H_out:stride,
                           kw:kw + stride * W_out:stride, :])
    patches = jnp.stack(cols, axis=3)                       # (N, H_out, W_out, k*k, C)
    return patches.reshape(N * H_out * W_out, k * k * C), H_out, W_out


# --------------------------------------------------------------------------------------
# Kernels (all grids are 1-D over M tiles and fully "parallel")
# --------------------------------------------------------------------------------------
def _conv_stats_kernel(patch_ref, w_ref, psum_ref, psq_ref):
    """MXU: bf16 sign-patches x bf16 sign-weights -> exact +/-1 counts in f32; emit per-tile
    partial sum / sum-of-squares (zero-padded tail rows contribute exactly zero)."""
    s = jnp.dot(patch_ref[...], w_ref[...], preferred_element_type=jnp.float32)
    psum_ref[...] = jnp.sum(s, axis=0, keepdims=True)[None]
    psq_ref[...] = jnp.sum(s * s, axis=0, keepdims=True)[None]


def _conv_store_stats_kernel(patch_ref, w_ref, s_ref, psum_ref, psq_ref):
    """Same as _conv_stats_kernel but also materializes the raw conv response (used when the
    im2col stream is wider than the f32 response round trip, i.e. large k*k*C_in)."""
    s = jnp.dot(patch_ref[...], w_ref[...], preferred_element_type=jnp.float32)
    s_ref[...] = s
    psum_ref[...] = jnp.sum(s, axis=0, keepdims=True)[None]
    psq_ref[...] = jnp.sum(s * s, axis=0, keepdims=True)[None]


def _conv_affine_relu_kernel(patch_ref, w_ref, ab_ref, o_ref):
    """Recompute the cheap bf16 matmul (no f32 HBM round trip) and apply the folded
    BatchNorm affine + ReLU.  Lane-dense f32 stores."""
    s = jnp.dot(patch_ref[...], w_ref[...], preferred_element_type=jnp.float32)
    o_ref[...] = jnp.maximum(s * ab_ref[0:1, :] + ab_ref[1:2, :], 0.0)


def _affine_relu_kernel(s_ref, ab_ref, o_ref):
    """Folded BatchNorm affine + ReLU on a stored conv-response tile."""
    o_ref[...] = jnp.maximum(s_ref[...] * ab_ref[0:1, :] + ab_ref[1:2, :], 0.0)


# --------------------------------------------------------------------------------------
# Fused XNORConv2d + BatchNorm2d(train) + ReLU
# --------------------------------------------------------------------------------------
def xnor_conv_bn_relu(x_nhwc, fp_weight, bias, gamma, beta, *,
                      stride=1, padding=0, eps=1e-4, max_tile_m=None, store_conv=None):
    """x_nhwc: (N, H, W, C_in) f32 channels-last; fp_weight: (C_out, C_in, k, k) OIHW f32;
    bias/gamma/beta: (C_out,) f32.  Returns (N, H_out, W_out, C_out) f32 channels-last.

    store_conv: None -> auto.  True materializes the raw conv response between the passes
    (best when the im2col stream is wide, k > 1); False recomputes the matmul in pass 2
    (best for 1x1 convs: saves the f32 round trip through HBM)."""
    N, H, W, C_in = x_nhwc.shape
    C_out, C_in_w, k, k2 = fp_weight.shape
    assert C_in_w == C_in and k == k2

    # ---- xnor_binarize weight path (tiny per-layer glue) ----
    w = fp_weight - jnp.mean(fp_weight, axis=1, keepdims=True)
    w = jnp.clip(w, -1.0, 1.0)
    wscale = jnp.mean(jnp.abs(w.reshape(C_out, -1)), axis=1)            # (C_out,)
    w_sign = jnp.sign(w).astype(jnp.bfloat16)                           # {-1, 0, +1} exact
    w_mat = w_sign.transpose(2, 3, 1, 0).reshape(k * k * C_in, C_out)   # K ordered (kh, kw, c)

    # ---- binary activation, then channels-last im2col on the narrow bf16 stream ----
    xs = jnp.sign(x_nhwc).astype(jnp.bfloat16)
    patches, H_out, W_out = _im2col_nhwc(xs, k, stride, padding)
    M, K = patches.shape

    # ---- lane/sublane padding (exact: zero rows/cols contribute nothing anywhere) ----
    C_pad = _round_up(C_out, 128)
    K_pad = _round_up(K, 128)
    tile_m = _pick_tile_m(M, K_pad, C_pad, max_tile_m)
    M_pad = _round_up(M, tile_m)
    n_tiles = M_pad // tile_m

    patches = jnp.pad(patches, ((0, M_pad - M), (0, K_pad - K)))
    w_mat = jnp.pad(w_mat, ((0, K_pad - K), (0, C_pad - C_out)))

    if store_conv is None:
        # Pass-2 re-read of the bf16 patch stream costs 2*K_pad bytes/row; materializing the f32
        # response costs 8*C_pad bytes/row (write + read).  Pick the cheaper option.
        store_conv = 2 * K_pad >= 8 * C_pad

    patch_spec = pl.BlockSpec((tile_m, K_pad), lambda i: (i, 0))
    w_spec = pl.BlockSpec((K_pad, C_pad), lambda i: (0, 0))       # resident binarized weights
    row_spec = pl.BlockSpec((tile_m, C_pad), lambda i: (i, 0))
    vec_spec = pl.BlockSpec((2, C_pad), lambda i: (0, 0))         # [scale; shift]
    stat_spec = pl.BlockSpec((1, 1, C_pad), lambda i: (i, 0, 0))  # per-tile partial statistics
    stat_shape = jax.ShapeDtypeStruct((n_tiles, 1, C_pad), jnp.float32)
    cparams = pltpu.CompilerParams(dimension_semantics=("parallel",),
                                   vmem_limit_bytes=_VMEM_LIMIT_BYTES)

    # ---- pass 1: tiled matmul -> per-tile BN sufficient statistics (megacore-parallel) ----
    # TODO(synk): if DMA is still exposed at production shapes, raise the patch stream to
    #             pipeline_mode=pl.Buffered(3) (a 3rd buffer fits the VMEM budget).
    if store_conv:
        s_raw, psum, psq = pl.pallas_call(
            _conv_store_stats_kernel,
            grid=(n_tiles,),
            in_specs=[patch_spec, w_spec],
            out_specs=(row_spec, stat_spec, stat_spec),
            out_shape=(jax.ShapeDtypeStruct((M_pad, C_pad), jnp.float32),
                       stat_shape, stat_shape),
            compiler_params=cparams,
        )(patches, w_mat)
    else:
        s_raw = None
        psum, psq = pl.pallas_call(
            _conv_stats_kernel,
            grid=(n_tiles,),
            in_specs=[patch_spec, w_spec],
            out_specs=(stat_spec, stat_spec),
            out_shape=(stat_shape, stat_shape),
            compiler_params=cparams,
        )(patches, w_mat)

    # ---- finalize BN affine per channel (tiny glue on (C,) vectors) ----
    # Raw-count statistics: s = sum(+/-1), y = wscale*s + bias  =>
    #   y - mean_y = wscale*(s - mean_s)   and   var_y = wscale^2 * var_s   (conv bias cancels).
    mean_s = psum.sum(axis=(0, 1)) / M
    var_s = jnp.maximum(psq.sum(axis=(0, 1)) / M - mean_s * mean_s, 0.0)
    wscale_p = jnp.pad(wscale, (0, C_pad - C_out))
    gamma_p = jnp.pad(jnp.maximum(gamma, 0.01),     # NIN.forward clamps BN gammas before every use
                      (0, C_pad - C_out), constant_values=1.0)
    beta_p = jnp.pad(beta, (0, C_pad - C_out))
    inv_std = lax.rsqrt(wscale_p * wscale_p * var_s + eps)      # rsqrt(var_y + eps)
    a = gamma_p * inv_std * wscale_p
    b = beta_p - a * mean_s
    ab = jnp.stack([a, b]).astype(jnp.float32)                  # (2, C_pad)

    # ---- pass 2: folded BN scale/shift + ReLU, lane-dense stores, megacore-parallel ----
    out_shape = jax.ShapeDtypeStruct((M_pad, C_pad), jnp.float32)
    if store_conv:
        out = pl.pallas_call(
            _affine_relu_kernel,
            grid=(n_tiles,),
            in_specs=[row_spec, vec_spec],
            out_specs=row_spec,
            out_shape=out_shape,
            compiler_params=cparams,
        )(s_raw, ab)
    else:
        out = pl.pallas_call(
            _conv_affine_relu_kernel,
            grid=(n_tiles,),
            in_specs=[patch_spec, w_spec, vec_spec],
            out_specs=row_spec,
            out_shape=out_shape,
            compiler_params=cparams,
        )(patches, w_mat, ab)

    # Kept channels-last (NHWC) for the downstream consumer; padding sliced off.
    return out[:M, :C_out].reshape(N, H_out, W_out, C_out)


# --------------------------------------------------------------------------------------
# Pure-JAX reference of the binary block (mirrors the PyTorch module op-for-op), NCHW.
# --------------------------------------------------------------------------------------
def _reference_nchw(x, fp_weight, bias, gamma, beta, *, stride, padding, eps=1e-4):
    w = fp_weight - jnp.mean(fp_weight, axis=1, keepdims=True)
    w = jnp.clip(w, -1.0, 1.0)
    mean_val = jnp.mean(jnp.abs(w.reshape(w.shape[0], -1)), axis=1)
    bi_w = jnp.sign(w) * mean_val[:, None, None, None]
    xb = jnp.sign(x)
    y = lax.conv_general_dilated(
        xb, bi_w, window_strides=(stride, stride),
        padding=[(padding, padding), (padding, padding)],
        dimension_numbers=("NCHW", "OIHW", "NCHW"))
    y = y + bias[None, :, None, None]
    g = jnp.maximum(gamma, 0.01)
    mean = y.mean(axis=(0, 2, 3), keepdims=True)
    var = jnp.mean((y - mean) ** 2, axis=(0, 2, 3), keepdims=True)
    out = (y - mean) * lax.rsqrt(var + eps)
    out = out * g.reshape(1, -1, 1, 1) + beta.reshape(1, -1, 1, 1)
    return jnp.maximum(out, 0.0)


# --------------------------------------------------------------------------------------
# Full NIN forward (training-mode BN), channels-last.  Binary blocks -> Pallas; rest -> XLA.
# --------------------------------------------------------------------------------------
_NIN_BLOCKS = (
    # (name, C_in, C_out, k, padding) — all binary blocks in NIN are stride 1.
    ("conv2_1", 192, 160, 1, 0),
    ("conv2_2", 160, 96, 1, 0),
    ("conv3_1", 96, 192, 5, 2),
    ("conv3_2", 192, 192, 1, 0),
    ("conv3_3", 192, 192, 1, 0),
    ("conv4_1", 192, 192, 3, 1),
    ("conv4_2", 192, 192, 1, 0),
)


def _conv2d_nhwc(x, w_oihw, b, stride, padding):
    y = lax.conv_general_dilated(
        x, jnp.transpose(w_oihw, (2, 3, 1, 0)),
        window_strides=(stride, stride),
        padding=[(padding, padding), (padding, padding)],
        dimension_numbers=("NHWC", "HWIO", "NHWC"))
    return y + b


def _bn_train_nhwc(x, gamma, beta, eps=1e-4):
    gamma = jnp.maximum(gamma, 0.01)      # NIN.forward clamp
    mean = jnp.mean(x, axis=(0, 1, 2), keepdims=True)
    var = jnp.mean((x - mean) ** 2, axis=(0, 1, 2), keepdims=True)
    return (x - mean) * lax.rsqrt(var + eps) * gamma + beta


def _max_pool_nhwc(x, k, s, p):
    return lax.reduce_window(x, -jnp.inf, lax.max,
                             (1, k, k, 1), (1, s, s, 1),
                             [(0, 0), (p, p), (p, p), (0, 0)])


def _avg_pool_nhwc(x, k, s, p):
    y = lax.reduce_window(x, 0.0, lax.add,
                          (1, k, k, 1), (1, s, s, 1),
                          [(0, 0), (p, p), (p, p), (0, 0)])
    return y / float(k * k)               # PyTorch avg_pool2d default: count_include_pad=True


def _init_nin_params(key):
    ks = jax.random.split(key, 2 + len(_NIN_BLOCKS))
    p = {
        "conv1_w": 0.05 * jax.random.normal(ks[0], (192, 3, 5, 5), jnp.float32),
        "conv1_b": jnp.zeros((192,), jnp.float32),
        "bn1_g": jnp.ones((192,), jnp.float32),
        "bn1_b": jnp.zeros((192,), jnp.float32),
        "bn5_g": jnp.ones((192,), jnp.float32),
        "bn5_b": jnp.zeros((192,), jnp.float32),
        "conv5_w": 0.05 * jax.random.normal(ks[1], (10, 192, 1, 1), jnp.float32),
        "conv5_b": jnp.zeros((10,), jnp.float32),
    }
    for i, (name, cin, cout, k, _pad) in enumerate(_NIN_BLOCKS):
        p[name] = {
            "w": 0.05 * jax.random.normal(ks[2 + i], (cout, cin, k, k), jnp.float32),
            "b": jnp.zeros((cout,), jnp.float32),
            "g": jnp.ones((cout,), jnp.float32),
            "beta": jnp.zeros((cout,), jnp.float32),
        }
    return p


def nin_forward(x_nhwc, p):
    """NIN.forward (training-mode BN).  Input (N, H, W, 3) with H = W = 32 -> (N, 10)."""
    pads = {name: pad for name, _ci, _co, _k, pad in _NIN_BLOCKS}

    def xnor_block(x, name):
        blk = p[name]
        return xnor_conv_bn_relu(x, blk["w"], blk["b"], blk["g"], blk["beta"],
                                 stride=1, padding=pads[name])

    # TODO(synk): conv1/conv5, bn1/bn5 and the pooling stages are full precision -> plain XLA.
    x = _conv2d_nhwc(x_nhwc, p["conv1_w"], p["conv1_b"], 1, 2)
    x = jnp.maximum(_bn_train_nhwc(x, p["bn1_g"], p["bn1_b"]), 0.0)
    x = xnor_block(x, "conv2_1")
    x = xnor_block(x, "conv2_2")
    x = _max_pool_nhwc(x, 3, 2, 1)
    x = xnor_block(x, "conv3_1")
    x = xnor_block(x, "conv3_2")
    x = xnor_block(x, "conv3_3")
    x = _avg_pool_nhwc(x, 3, 2, 1)
    x = xnor_block(x, "conv4_1")
    x = xnor_block(x, "conv4_2")
    x = _bn_train_nhwc(x, p["bn5_g"], p["bn5_b"])
    x = jnp.maximum(_conv2d_nhwc(x, p["conv5_w"], p["conv5_b"], 1, 0), 0.0)
    x = _avg_pool_nhwc(x, 8, 8, 0)
    return x.reshape(x.shape[0], -1)


if __name__ == "__main__":
    key = jax.random.PRNGKey(0)

    # Small XNORConvBNReLU configs covering both kernel paths:
    # (N, C_in, C_out, H, W, k, stride, padding, max_tile_m, store_conv)
    configs = [
        (2, 4, 8, 16, 16, 3, 1, 1, None, None),   # 3x3, single M tile, recompute path
        (2, 8, 16, 8, 8, 1, 1, 0, None, None),    # 1x1 (no im2col duplication), recompute path
        (2, 4, 8, 15, 15, 3, 2, 1, 48, None),     # strided, multi-tile grid, zero-padded tail rows
        (2, 4, 8, 15, 15, 3, 2, 1, 48, True),     # same config, forcing the store-response path
    ]
    for (N, C_in, C_out, H, W, k, stride, padding, max_tile_m, store_conv) in configs:
        key, kx, kw, kb, kg, kbt = jax.random.split(key, 6)
        x = jax.random.normal(kx, (N, C_in, H, W), dtype=jnp.float32)            # NCHW (PyTorch)
        fp_w = 0.05 * jax.random.normal(kw, (C_out, C_in, k, k), jnp.float32)    # XNORConv2d init
        bias = 0.1 * jax.random.normal(kb, (C_out,), jnp.float32)
        gamma = 1.0 + 0.1 * jax.random.normal(kg, (C_out,), jnp.float32)
        beta = 0.1 * jax.random.normal(kbt, (C_out,), jnp.float32)

        out_nhwc = xnor_conv_bn_relu(
            jnp.transpose(x, (0, 2, 3, 1)), fp_w, bias, gamma, beta,
            stride=stride, padding=padding, max_tile_m=max_tile_m,
            store_conv=store_conv)
        out_nhwc = jax.block_until_ready(out_nhwc)

        ref = _reference_nchw(x, fp_w, bias, gamma, beta, stride=stride, padding=padding)
        out = jnp.transpose(out_nhwc, (0, 3, 1, 2))     # NCHW only for the comparison
        assert out.shape == ref.shape, (out.shape, ref.shape)
        err = float(jnp.max(jnp.abs(out - ref)))
        assert jnp.allclose(out, ref, atol=1e-3, rtol=1e-3), err

    # Smoke-run the full NIN forward at its natural (CIFAR) size so every binary block goes
    # through the Pallas kernels at real channel counts (correctness of each block is asserted
    # above; the full net is not bit-compared because sign() cascades are discontinuous).
    key, kx = jax.random.split(key)
    params = _init_nin_params(key)
    x_img = jax.random.normal(kx, (2, 32, 32, 3), dtype=jnp.float32)
    logits = jax.block_until_ready(nin_forward(x_img, params))
    assert logits.shape == (2, 10), logits.shape
    assert bool(jnp.all(jnp.isfinite(logits)))

    print("KERNEL_OK")
</pallas_src>

<mosaic_0001>
module attributes {stable_mosaic.version = 11 : i64} {
  func.func @_conv_stats_kernel(%arg0: i32, %arg1: memref<512x128xbf16, #tpu.memory_space<vmem>>, %arg2: memref<128x128xbf16, #tpu.memory_space<vmem>>, %arg3: memref<1x1x128xf32, #tpu.memory_space<vmem>>, %arg4: memref<1x1x128xf32, #tpu.memory_space<vmem>>) attributes {dimension_semantics = [#tpu.dimension_semantics<parallel>], iteration_bounds = array<i64: 1>, scalar_prefetch = 0 : i64, scratch_operands = 0 : i64, tpu.core_type = #tpu.core_type<tc>, window_params = [{transform_indices = @transform_0, window_bounds = array<i64: 512, 128>}, {pipeline_mode = #tpu.pipeline_mode<synchronous>, transform_indices = @transform_1, window_bounds = array<i64: 128, 128>}, {transform_indices = @transform_2, window_bounds = array<i64: 1, 1, 128>}, {transform_indices = @transform_3, window_bounds = array<i64: 1, 1, 128>}]} {
    %c0 = arith.constant 0 : index
    %c0_0 = arith.constant 0 : index
    %0 = vector.load %arg1[%c0, %c0_0] : memref<512x128xbf16, #tpu.memory_space<vmem>>, vector<512x128xbf16>
    %c0_1 = arith.constant 0 : index
    %c0_2 = arith.constant 0 : index
    %1 = vector.load %arg2[%c0_1, %c0_2] : memref<128x128xbf16, #tpu.memory_space<vmem>>, vector<128x128xbf16>
    %cst = arith.constant dense<0.000000e+00> : vector<512x128xf32>
    %2 = tpu.matmul %0, %1, %cst {dimension_numbers = #tpu.dot_dimension_numbers<[1], [0], [0], [1], [0, 0, 1, 1], [], []>} : vector<512x128xbf16>, vector<128x128xbf16>, vector<512x128xf32> -> vector<512x128xf32>
    %cst_3 = arith.constant dense<0.000000e+00> : vector<128xf32>
    %3 = vector.multi_reduction <add>, %2, %cst_3 [0] : vector<512x128xf32> to vector<128xf32>
    %4 = vector.shape_cast %3 : vector<128xf32> to vector<1x128xf32>
    %5 = vector.shape_cast %4 : vector<1x128xf32> to vector<1x1x128xf32>
    %c0_4 = arith.constant 0 : index
    %c0_5 = arith.constant 0 : index
    %c0_6 = arith.constant 0 : index
    %6 = vector.load %arg3[%c0_4, %c0_5, %c0_6] : memref<1x1x128xf32, #tpu.memory_space<vmem>>, vector<1x1x128xf32>
    tpu.vector_store %arg3[%c0_4, %c0_5, %c0_6], %5 {strides = array<i32>} : memref<1x1x128xf32, #tpu.memory_space<vmem>>, vector<1x1x128xf32>,
    %7 = arith.mulf %2, %2 : vector<512x128xf32>
    %cst_7 = arith.constant dense<0.000000e+00> : vector<128xf32>
    %8 = vector.multi_reduction <add>, %7, %cst_7 [0] : vector<512x128xf32> to vector<128xf32>
    %9 = vector.shape_cast %8 : vector<128xf32> to vector<1x128xf32>
    %10 = vector.shape_cast %9 : vector<1x128xf32> to vector<1x1x128xf32>
    %c0_8 = arith.constant 0 : index
    %c0_9 = arith.constant 0 : index
    %c0_10 = arith.constant 0 : index
    %11 = vector.load %arg4[%c0_8, %c0_9, %c0_10] : memref<1x1x128xf32, #tpu.memory_space<vmem>>, vector<1x1x128xf32>
    tpu.vector_store %arg4[%c0_8, %c0_9, %c0_10], %10 {strides = array<i32>} : memref<1x1x128xf32, #tpu.memory_space<vmem>>, vector<1x1x128xf32>,
    return
  }
  func.func @transform_0(%arg0: i32) -> (i32, i32) {
    %c0_i32 = arith.constant 0 : i32
    %c0_i32_0 = arith.constant 0 : i32
    return %arg0, %c0_i32 : i32, i32
  }
  func.func @transform_1(%arg0: i32) -> (i32, i32) {
    %c0_i32 = arith.constant 0 : i32
    %c0_i32_0 = arith.constant 0 : i32
    %c0_i32_1 = arith.constant 0 : i32
    return %c0_i32, %c0_i32_0 : i32, i32
  }
  func.func @transform_2(%arg0: i32) -> (i32, i32, i32) {
    %c0_i32 = arith.constant 0 : i32
    %c0_i32_0 = arith.constant 0 : i32
    %c0_i32_1 = arith.constant 0 : i32
    return %arg0, %c0_i32, %c0_i32_0 : i32, i32, i32
  }
  func.func @transform_3(%arg0: i32) -> (i32, i32, i32) {
    %c0_i32 = arith.constant 0 : i32
    %c0_i32_0 = arith.constant 0 : i32
    %c0_i32_1 = arith.constant 0 : i32
    return %arg0, %c0_i32, %c0_i32_0 : i32, i32, i32
  }
}

</mosaic_0001>

<bundles_post_ra>
// kernel: tpu_custom_call.1
= control target key start
LH: loop header
LB: loop body
LE: loop exit
PB: predicated region body
PF: predicated region fallthrough
CT: control target
= control target key end

     0   :  { %9 = vsyncpa [#allocation3], 0  ;;  %s1447_s0 = inlined_call_operand.hbm [shape: bf16[512,128], index: 0, kind: input, shape index: {}]   ;;  %s1448_s1 = inlined_call_operand.hbm [shape: bf16[128,128], index: 1, kind: input, shape index: {}]   ;;  %s1449_s2 = inlined_call_operand.hbm [shape: f32[1,1,128], index: 2, kind: output, shape index: {0}]   ;;  %s1450_s3 = inlined_call_operand.hbm [shape: f32[1,1,128], index: 3, kind: output, shape index: {1}]  }
   0x1   :  { %10 = vsyncpa [#allocation6], 0 }
   0x2   :  { %11 = vsyncpa [#allocation4], 0 }
   0x3   :  { %12 = vsyncpa [#allocation9], 0  ;;  %s1205_s12 = smov [#allocation2]   ;;  %s1109_s16 = scalar_lea.hbm %s1447_s0, 4096 }
   0x4   :  { %s18_s13 = sshll.u32 %s1205_s12, 4  ;;  %p1110_p0 = scmp.ne.s32.totalorder %s1447_s0, %s1109_s16  ;;  %s19_s13 = int_to_ptr.vmem [resolvable:$true] %s18_s13 }
   0x5   :  { %p1113_p1 = scmp.lt.u32.totalorder %s1109_s16, %s1447_s0 }
   0x7   :  { %p1115_p2 = pnand %p1113_p1, %p1110_p0 }
   0x9   :  { %1118 = shalt.err (!%p1115_p2)
}
   0xa   :  { %s1119_s21 = scalar_lea.vmem %s19_s13, 4096  ;;  %p1124_p4 = scmp.lt.s32.totalorder %s19_s13, %s19_s13 }
   0xb   :  { %p1120_p3 = scmp.ne.s32.totalorder %s19_s13, %s1119_s21  ;;  %p1125_p5 = scmp.lt.s32.totalorder %s1119_s21, %s1119_s21 }
   0xd   :  { %p1126_p6 = por %p1125_p5, %p1124_p4 }
   0xf   :  { %p1127_p7 = pnand %p1126_p6, %p1120_p3 }
  0x11   :  { %1130 = shalt.err (!%p1127_p7)
}
  0x12   :  { %s1206_s22 = smov 64   ;;  %s1207_s23 = smov 4  }
  0x13   :  { %24 = dma.hbm_to_vmem [thread:$0]  %s1447_s0, 4096, %s19_s13, [#allocation3], %s1206_s22, %s1206_s22, %s1207_s23  }
  0x14   :  { %s1208_s26 = smov [#allocation5]   ;;  %s1131_s30 = scalar_lea.hbm %s1448_s1, 1024 }
  0x15   :  { %s30_s27 = sshll.u32 %s1208_s26, 4  ;;  %p1132_p8 = scmp.ne.s32.totalorder %s1448_s1, %s1131_s30  ;;  %s31_s27 = int_to_ptr.vmem [resolvable:$true] %s30_s27 }
  0x16   :  { %p1135_p9 = scmp.lt.u32.totalorder %s1131_s30, %s1448_s1 }
  0x18   :  { %p1137_p10 = pnand %p1135_p9, %p1132_p8 }
  0x1a   :  { %1140 = shalt.err (!%p1137_p10)
}
  0x1b   :  { %s1141_s8 = scalar_lea.vmem %s31_s27, 1024  ;;  %p1146_p12 = scmp.lt.s32.totalorder %s31_s27, %s31_s27 }
  0x1c   :  { %p1142_p11 = scmp.ne.s32.totalorder %s31_s27, %s1141_s8  ;;  %p1147_p13 = scmp.lt.s32.totalorder %s1141_s8, %s1141_s8 }
  0x1e   :  { %p1148_p0 = por %p1147_p13, %p1146_p12 }
  0x20   :  { %p1149_p1 = pnand %p1148_p0, %p1142_p11 }
  0x22   :  { %1152 = shalt.err (!%p1149_p1)
}
  0x23   :  { %36 = dma.hbm_to_vmem [thread:$0]  %s1448_s1, 1024, %s31_s27, [#allocation6], %s1206_s22, %s1206_s22, %s1207_s23  }
  0x24   :  { %1197 = dma.done.wait [#allocation3], 4096  }
  0x25   :  { %1198 = vsyncadd [#allocation3], 4294963200 }
  0x26   :  { %1199 = dma.done.wait [#allocation6], 1024  }
  0x27   :  { %1200 = vsyncadd [#allocation6], 4294966272  ;;  %v1069_v0 = vld [vmem:[#allocation5] sm:$0xff]   ;;  %v1070_v1 = vld [vmem:[#allocation5 + $0x8] sm:$0xff]   ;;  %s1209_s1 = smov [#allocation7]   ;;  %s1210_s11 = smov [#allocation8]  }
  0x28   :  { %967 = vmatprep.subr.bf16.mxu0 %v1069_v0  ;;  %1047 = vmatprep.subr.bf16.mxu1 %v1069_v0  ;;  %v1071_v2 = vld [vmem:[#allocation5 + $0x10] sm:$0xff]   ;;  %v1072_v3 = vld [vmem:[#allocation5 + $0x18] sm:$0xff]   ;;  %v1077_v4 = vld [vmem:[#allocation2] sm:$0xff]   ;;  %s863_s10 = sshll.u32 %s1209_s1, 4  ;;  %s873_s12 = sshll.u32 %s1210_s11, 4  ;;  %s864_s10 = int_to_ptr.vmem [resolvable:$true] %s863_s10  ;;  %s1415_s12 = int_to_ptr.vmem [resolvable:$true] %s873_s12 }
  0x29   :  { %968 = vmatpush3.bf16.msra.mxu0 %v1069_v0  ;;  %1055 = vmatpush3.bf16.msra.mxu1 %v1069_v0  ;;  %v1073_v5 = vld [vmem:[#allocation5 + $0x20] sm:$0xff]   ;;  %v1074_v6 = vld [vmem:[#allocation5 + $0x28] sm:$0xff]   ;;  %v1075_v7 = vld [vmem:[#allocation5 + $0x30] sm:$0xff]   ;;  %s1153_s13 = scalar_lea.vmem %s864_s10, 16  ;;  %s1157_s14 = scalar_lea.vmem %s864_s10, 32 }
  0x2a   :  { %969 = vmatprep.subr.bf16.mxu0 %v1070_v1  ;;  %1048 = vmatprep.subr.bf16.mxu1 %v1070_v1  ;;  %v1076_v8 = vld [vmem:[#allocation5 + $0x38] sm:$0xff]   ;;  %v1093_v9 = vld [vmem:[#allocation2 + $0x80] sm:$0xff]   ;;  %v1078_v10 = vld [vmem:[#allocation2 + $0x8] sm:$0xff]   ;;  %p1154_p2 = scmp.ne.s32.totalorder %s864_s10, %s1153_s13  ;;  %p1158_p3 = scmp.lt.s32.totalorder %s864_s10, %s864_s10 }
  0x2b   :  { %983 = vmatprep.mubr.bf16.mxu0 %v1077_v4  ;;  %1015 = vmatprep.mubr.bf16.mxu1 %v1093_v9  ;;  %v1079_v11 = vld [vmem:[#allocation2 + $0x10] sm:$0xff]   ;;  %v1094_v12 = vld [vmem:[#allocation2 + $0x88] sm:$0xff]   ;;  %v1080_v14 = vld [vmem:[#allocation2 + $0x18] sm:$0xff]   ;;  %p1159_p4 = scmp.lt.s32.totalorder %s1157_s14, %s1153_s13 }
  0x2c   :  { %v1095_v13 = vld [vmem:[#allocation2 + $0x90] sm:$0xff]   ;;  %v1081_v15 = vld [vmem:[#allocation2 + $0x20] sm:$0xff]   ;;  %v1096_v16 = vld [vmem:[#allocation2 + $0x98] sm:$0xff]  }
  0x2d   :  { %970 = vmatpush3.bf16.msra.mxu0 %v1070_v1  ;;  %1056 = vmatpush3.bf16.msra.mxu1 %v1070_v1  ;;  %v1097_v17 = vld [vmem:[#allocation2 + $0xa0] sm:$0xff]   ;;  %v1082_v18 = vld [vmem:[#allocation2 + $0x28] sm:$0xff]   ;;  %v1083_v20 = vld [vmem:[#allocation2 + $0x30] sm:$0xff]   ;;  %p1160_p5 = por %p1159_p4, %p1158_p3 }
  0x2e   :  { %971 = vmatprep.subr.bf16.mxu0 %v1071_v2  ;;  %1049 = vmatprep.subr.bf16.mxu1 %v1071_v2  ;;  %v1098_v19 = vld [vmem:[#allocation2 + $0xa8] sm:$0xff]   ;;  %v1099_v21 = vld [vmem:[#allocation2 + $0xb0] sm:$0xff]   ;;  %v1084_v22 = vld [vmem:[#allocation2 + $0x38] sm:$0xff]  }
  0x2f   :  { %v1100_v23 = vld [vmem:[#allocation2 + $0xb8] sm:$0xff]   ;;  %v1085_v24 = vld [vmem:[#allocation2 + $0x40] sm:$0xff]   ;;  %v1086_v26 = vld [vmem:[#allocation2 + $0x48] sm:$0xff]   ;;  %p1161_p6 = pnand %p1160_p5, %p1154_p2 }
  0x30   :  { %v1101_v25 = vld [vmem:[#allocation2 + $0xc0] sm:$0xff]   ;;  %v1102_v27 = vld [vmem:[#allocation2 + $0xc8] sm:$0xff]   ;;  %v1087_v28 = vld [vmem:[#allocation2 + $0x50] sm:$0xff]  }
  0x31   :  { %972 = vmatpush3.bf16.msra.mxu0 %v1071_v2  ;;  %1057 = vmatpush3.bf16.msra.mxu1 %v1071_v2  ;;  %v1103_v29 = vld [vmem:[#allocation2 + $0xd0] sm:$0xff]   ;;  %v1088_v30 = vld [vmem:[#allocation2 + $0x58] sm:$0xff]   ;;  %v1089_v32 = vld [vmem:[#allocation2 + $0x60] sm:$0xff]  }
  0x32   :  { %973 = vmatprep.subr.bf16.mxu0 %v1072_v3  ;;  %1050 = vmatprep.subr.bf16.mxu1 %v1072_v3  ;;  %v1104_v31 = vld [vmem:[#allocation2 + $0xd8] sm:$0xff]   ;;  %v1105_v33 = vld [vmem:[#allocation2 + $0xe0] sm:$0xff]   ;;  %v1090_v34 = vld [vmem:[#allocation2 + $0x68] sm:$0xff]  }
  0x33   :  { %v1106_v35 = vld [vmem:[#allocation2 + $0xe8] sm:$0xff]   ;;  %v1091_v36 = vld [vmem:[#allocation2 + $0x70] sm:$0xff]   ;;  %v1092_v38 = vld [vmem:[#allocation2 + $0x78] sm:$0xff]  }
  0x34   :  { %v1107_v37 = vld [vmem:[#allocation2 + $0xf0] sm:$0xff]   ;;  %v1108_v39 = vld [vmem:[#allocation2 + $0xf8] sm:$0xff]  }
  0x35   :  { %974 = vmatpush3.bf16.msra.mxu0 %v1072_v3  ;;  %1058 = vmatpush3.bf16.msra.mxu1 %v1072_v3 }
  0x36   :  { %975 = vmatprep.subr.bf16.mxu0 %v1073_v5  ;;  %1051 = vmatprep.subr.bf16.mxu1 %v1073_v5 }
  0x39   :  { %976 = vmatpush3.bf16.msra.mxu0 %v1073_v5  ;;  %1059 = vmatpush3.bf16.msra.mxu1 %v1073_v5 }
  0x3a   :  { %977 = vmatprep.subr.bf16.mxu0 %v1074_v6  ;;  %1052 = vmatprep.subr.bf16.mxu1 %v1074_v6 }
  0x3d   :  { %978 = vmatpush3.bf16.msra.mxu0 %v1074_v6  ;;  %1060 = vmatpush3.bf16.msra.mxu1 %v1074_v6 }
  0x3e   :  { %979 = vmatprep.subr.bf16.mxu0 %v1075_v7  ;;  %1053 = vmatprep.subr.bf16.mxu1 %v1075_v7 }
  0x41   :  { %980 = vmatpush3.bf16.msra.mxu0 %v1075_v7  ;;  %1061 = vmatpush3.bf16.msra.mxu1 %v1075_v7 }
  0x42   :  { %981 = vmatprep.subr.bf16.mxu0 %v1076_v8  ;;  %1054 = vmatprep.subr.bf16.mxu1 %v1076_v8 }
  0x45   :  { %982 = vmatpush3.bf16.msra.mxu0 %v1076_v8  ;;  %1062 = vmatpush3.bf16.msra.mxu1 %v1076_v8 }
  0x48   :  { %984 = vmatmul.mubr.bf16.vlgmr.msra.gmra.mrb[0].mxu0 %v1078_v10  ;;  %1016 = vmatmul.mubr.bf16.vlgmr.msra.gmra.mrb[0].mxu1 %v1094_v12 }
  0x49   :  { %987 = vmatprep.mubr.bf16.mxu0 %v1079_v11  ;;  %1019 = vmatprep.mubr.bf16.mxu1 %v1095_v13 }
  0x50   :  { %988 = vmatmul.mubr.bf16.gmra.mrb[4].mxu0 %v1080_v14  ;;  %1020 = vmatmul.mubr.bf16.gmra.mrb[4].mxu1 %v1096_v16 }
  0x51   :  { %991 = vmatprep.mubr.bf16.mxu0 %v1081_v15  ;;  %1023 = vmatprep.mubr.bf16.mxu1 %v1097_v17 }
  0x58   :  { %992 = vmatmul.mubr.bf16.gmra.mrb[8].mxu0 %v1082_v18  ;;  %1024 = vmatmul.mubr.bf16.gmra.mrb[8].mxu1 %v1098_v19 }
  0x59   :  { %995 = vmatprep.mubr.bf16.mxu0 %v1083_v20  ;;  %1027 = vmatprep.mubr.bf16.mxu1 %v1099_v21 }
  0x60   :  { %996 = vmatmul.mubr.bf16.gmra.mrb[12].mxu0 %v1084_v22  ;;  %1028 = vmatmul.mubr.bf16.gmra.mrb[12].mxu1 %v1100_v23 }
  0x61   :  { %999 = vmatprep.mubr.bf16.mxu0 %v1085_v24  ;;  %1031 = vmatprep.mubr.bf16.mxu1 %v1101_v25 }
  0x68   :  { %1000 = vmatmul.mubr.bf16.gmra.mrb[16].mxu0 %v1086_v26  ;;  %1032 = vmatmul.mubr.bf16.gmra.mrb[16].mxu1 %v1102_v27 }
  0x69   :  { %1003 = vmatprep.mubr.bf16.mxu0 %v1087_v28  ;;  %1035 = vmatprep.mubr.bf16.mxu1 %v1103_v29 }
  0x70   :  { %1004 = vmatmul.mubr.bf16.gmra.mrb[20].mxu0 %v1088_v30  ;;  %1036 = vmatmul.mubr.bf16.gmra.mrb[20].mxu1 %v1104_v31 }
  0x71   :  { %1007 = vmatprep.mubr.bf16.mxu0 %v1089_v32  ;;  %1039 = vmatprep.mubr.bf16.mxu1 %v1105_v33 }
  0x78   :  { %1008 = vmatmul.mubr.bf16.gmra.mrb[24].mxu0 %v1090_v34  ;;  %1040 = vmatmul.mubr.bf16.gmra.mrb[24].mxu1 %v1106_v35 }
  0x79   :  { %1011 = vmatprep.mubr.bf16.mxu0 %v1091_v36  ;;  %1043 = vmatprep.mubr.bf16.mxu1 %v1107_v37 }
  0x80   :  { %1012 = vmatmul.mubr.bf16.gmra.mrb[28].mxu0 %v1092_v38  ;;  %1044 = vmatmul.mubr.bf16.gmra.mrb[28].mxu1 %v1108_v39 }
 0x11b   :  { %v985_v40 = vpop.f32.mrb[0].mxu0  ;;  %v1255_v41 = vpop.f32.mrb[0].mxu1 }
 0x11c   :  { %v398_v42 = vpop.f32.mrb[1].mxu0  ;;  %v1257_v43 = vpop.f32.mrb[1].mxu1  ;;  %v725_v51 = vmul.f32 %v985_v40, %v985_v40 }
 0x11d   :  { %v986_v44 = vpop.f32.mrb[2].mxu0  ;;  %v1259_v45 = vpop.f32.mrb[2].mxu1  ;;  %v723_v48 = vmul.f32 %v398_v42, %v398_v42 }
 0x11e   :  { %v401_v46 = vpop.f32.mrb[3].mxu0  ;;  %v1261_v47 = vpop.f32.mrb[3].mxu1  ;;  %v726_v54 = vmul.f32 %v986_v44, %v986_v44 }
 0x11f   :  { %v653_v49 = vadd.f32 %v401_v46, %v398_v42  ;;  %v724_v50 = vmul.f32 %v401_v46, %v401_v46 }
 0x121   :  { %v654_v52 = vadd.f32 %v985_v40, %v653_v49  ;;  %v787_v53 = vadd.f32 %v724_v50, %v723_v48 }
 0x123   :  { %v788_v55 = vadd.f32 %v787_v53, %v725_v51  ;;  %v989_v56 = vpop.f32.mrb[4].mxu0  ;;  %v655_v57 = vadd.f32 %v986_v44, %v654_v52  ;;  %v1263_v58 = vpop.f32.mrb[4].mxu1 }
 0x124   :  { %v414_v59 = vpop.f32.mrb[5].mxu0  ;;  %v1265_v60 = vpop.f32.mrb[5].mxu1  ;;  %v729_v7 = vmul.f32 %v989_v56, %v989_v56 }
 0x125   :  { %v656_v61 = vadd.f32 %v655_v57, %v414_v59  ;;  %v727_v62 = vmul.f32 %v414_v59, %v414_v59  ;;  %v789_v63 = vadd.f32 %v788_v55, %v726_v54  ;;  %v990_v0 = vpop.f32.mrb[6].mxu0  ;;  %v1267_v1 = vpop.f32.mrb[6].mxu1 }
 0x126   :  { %v417_v2 = vpop.f32.mrb[7].mxu0  ;;  %v1269_v3 = vpop.f32.mrb[7].mxu1  ;;  %v730_v10 = vmul.f32 %v990_v0, %v990_v0 }
 0x127   :  { %v790_v4 = vadd.f32 %v789_v63, %v727_v62  ;;  %v657_v5 = vadd.f32 %v656_v61, %v417_v2  ;;  %v728_v6 = vmul.f32 %v417_v2, %v417_v2 }
 0x129   :  { %v658_v8 = vadd.f32 %v989_v56, %v657_v5  ;;  %v791_v9 = vadd.f32 %v790_v4, %v728_v6 }
 0x12b   :  { %v792_v11 = vadd.f32 %v791_v9, %v729_v7  ;;  %v993_v12 = vpop.f32.mrb[8].mxu0  ;;  %v659_v13 = vadd.f32 %v990_v0, %v658_v8  ;;  %v1271_v14 = vpop.f32.mrb[8].mxu1 }
 0x12c   :  { %v430_v15 = vpop.f32.mrb[9].mxu0  ;;  %v1273_v16 = vpop.f32.mrb[9].mxu1  ;;  %v733_v27 = vmul.f32 %v993_v12, %v993_v12 }
 0x12d   :  { %v660_v17 = vadd.f32 %v659_v13, %v430_v15  ;;  %v731_v18 = vmul.f32 %v430_v15, %v430_v15  ;;  %v793_v19 = vadd.f32 %v792_v11, %v730_v10  ;;  %v994_v20 = vpop.f32.mrb[10].mxu0  ;;  %v1275_v21 = vpop.f32.mrb[10].mxu1 }
 0x12e   :  { %v433_v22 = vpop.f32.mrb[11].mxu0  ;;  %v1277_v23 = vpop.f32.mrb[11].mxu1  ;;  %v734_v30 = vmul.f32 %v994_v20, %v994_v20 }
 0x12f   :  { %v794_v24 = vadd.f32 %v793_v19, %v731_v18  ;;  %v661_v25 = vadd.f32 %v660_v17, %v433_v22  ;;  %v732_v26 = vmul.f32 %v433_v22, %v433_v22 }
 0x131   :  { %v662_v28 = vadd.f32 %v993_v12, %v661_v25  ;;  %v795_v29 = vadd.f32 %v794_v24, %v732_v26 }
 0x133   :  { %v796_v31 = vadd.f32 %v795_v29, %v733_v27  ;;  %v997_v32 = vpop.f32.mrb[12].mxu0  ;;  %v663_v33 = vadd.f32 %v994_v20, %v662_v28  ;;  %v1279_v34 = vpop.f32.mrb[12].mxu1 }
 0x134   :  { %v446_v35 = vpop.f32.mrb[13].mxu0  ;;  %v1281_v36 = vpop.f32.mrb[13].mxu1  ;;  %v737_v51 = vmul.f32 %v997_v32, %v997_v32 }
 0x135   :  { %v664_v37 = vadd.f32 %v663_v33, %v446_v35  ;;  %v735_v38 = vmul.f32 %v446_v35, %v446_v35  ;;  %v797_v39 = vadd.f32 %v796_v31, %v734_v30  ;;  %v998_v40 = vpop.f32.mrb[14].mxu0  ;;  %v1283_v42 = vpop.f32.mrb[14].mxu1 }
 0x136   :  { %v449_v44 = vpop.f32.mrb[15].mxu0  ;;  %v1285_v46 = vpop.f32.mrb[15].mxu1  ;;  %v738_v54 = vmul.f32 %v998_v40, %v998_v40 }
 0x137   :  { %v798_v48 = vadd.f32 %v797_v39, %v735_v38  ;;  %v665_v49 = vadd.f32 %v664_v37, %v449_v44  ;;  %v736_v50 = vmul.f32 %v449_v44, %v449_v44 }
 0x139   :  { %v666_v52 = vadd.f32 %v997_v32, %v665_v49  ;;  %v799_v53 = vadd.f32 %v798_v48, %v736_v50 }
 0x13b   :  { %v800_v55 = vadd.f32 %v799_v53, %v737_v51  ;;  %v1001_v56 = vpop.f32.mrb[16].mxu0  ;;  %v667_v57 = vadd.f32 %v998_v40, %v666_v52  ;;  %v1287_v59 = vpop.f32.mrb[16].mxu1 }
 0x13c   :  { %v462_v61 = vpop.f32.mrb[17].mxu0  ;;  %v1289_v62 = vpop.f32.mrb[17].mxu1  ;;  %v741_v11 = vmul.f32 %v1001_v56, %v1001_v56 }
 0x13d   :  { %v668_v63 = vadd.f32 %v667_v57, %v462_v61  ;;  %v739_v0 = vmul.f32 %v462_v61, %v462_v61  ;;  %v801_v2 = vadd.f32 %v800_v55, %v738_v54  ;;  %v1002_v4 = vpop.f32.mrb[18].mxu0  ;;  %v1291_v5 = vpop.f32.mrb[18].mxu1 }
 0x13e   :  { %v465_v6 = vpop.f32.mrb[19].mxu0  ;;  %v1293_v7 = vpop.f32.mrb[19].mxu1  ;;  %v742_v15 = vmul.f32 %v1002_v4, %v1002_v4 }
 0x13f   :  { %v802_v8 = vadd.f32 %v801_v2, %v739_v0  ;;  %v669_v9 = vadd.f32 %v668_v63, %v465_v6  ;;  %v740_v10 = vmul.f32 %v465_v6, %v465_v6 }
 0x141   :  { %v670_v12 = vadd.f32 %v1001_v56, %v669_v9  ;;  %v803_v13 = vadd.f32 %v802_v8, %v740_v10 }
 0x143   :  { %v804_v17 = vadd.f32 %v803_v13, %v741_v11  ;;  %v1005_v18 = vpop.f32.mrb[20].mxu0  ;;  %v671_v19 = vadd.f32 %v1002_v4, %v670_v12  ;;  %v1295_v20 = vpop.f32.mrb[20].mxu1 }
 0x144   :  { %v478_v22 = vpop.f32.mrb[21].mxu0  ;;  %v1297_v24 = vpop.f32.mrb[21].mxu1  ;;  %v745_v37 = vmul.f32 %v1005_v18, %v1005_v18 }
 0x145   :  { %v672_v25 = vadd.f32 %v671_v19, %v478_v22  ;;  %v743_v26 = vmul.f32 %v478_v22, %v478_v22  ;;  %v805_v27 = vadd.f32 %v804_v17, %v742_v15  ;;  %v1006_v28 = vpop.f32.mrb[22].mxu0  ;;  %v1299_v29 = vpop.f32.mrb[22].mxu1 }
 0x146   :  { %v481_v30 = vpop.f32.mrb[23].mxu0  ;;  %v1301_v31 = vpop.f32.mrb[23].mxu1  ;;  %v746_v40 = vmul.f32 %v1006_v28, %v1006_v28 }
 0x147   :  { %v806_v32 = vadd.f32 %v805_v27, %v743_v26  ;;  %v673_v33 = vadd.f32 %v672_v25, %v481_v30  ;;  %v744_v35 = vmul.f32 %v481_v30, %v481_v30 }
 0x149   :  { %v674_v38 = vadd.f32 %v1005_v18, %v673_v33  ;;  %v807_v39 = vadd.f32 %v806_v32, %v744_v35 }
 0x14b   :  { %v808_v44 = vadd.f32 %v807_v39, %v745_v37  ;;  %v1009_v48 = vpop.f32.mrb[24].mxu0  ;;  %v675_v49 = vadd.f32 %v1006_v28, %v674_v38  ;;  %v1303_v50 = vpop.f32.mrb[24].mxu1 }
 0x14c   :  { %v494_v51 = vpop.f32.mrb[25].mxu0  ;;  %v1305_v52 = vpop.f32.mrb[25].mxu1  ;;  %v749_v6 = vmul.f32 %v1009_v48, %v1009_v48 }
 0x14d   :  { %v676_v53 = vadd.f32 %v675_v49, %v494_v51  ;;  %v747_v54 = vmul.f32 %v494_v51, %v494_v51  ;;  %v809_v55 = vadd.f32 %v808_v44, %v746_v40  ;;  %v1010_v56 = vpop.f32.mrb[26].mxu0  ;;  %v1307_v57 = vpop.f32.mrb[26].mxu1  ;;  %v755_v49 = vmul.f32 %v1257_v43, %v1257_v43 }
 0x14e   :  { %v497_v61 = vpop.f32.mrb[27].mxu0  ;;  %v1309_v63 = vpop.f32.mrb[27].mxu1  ;;  %v750_v10 = vmul.f32 %v1010_v56, %v1010_v56 }
 0x14f   :  { %v810_v0 = vadd.f32 %v809_v55, %v747_v54  ;;  %v677_v2 = vadd.f32 %v676_v53, %v497_v61  ;;  %v748_v4 = vmul.f32 %v497_v61, %v497_v61  ;;  %v757_v61 = vmul.f32 %v1255_v41, %v1255_v41 }
 0x151   :  { %v678_v8 = vadd.f32 %v1009_v48, %v677_v2  ;;  %v811_v9 = vadd.f32 %v810_v0, %v748_v4  ;;  %v758_v4 = vmul.f32 %v1259_v45, %v1259_v45 }
 0x153   :  { %v812_v11 = vadd.f32 %v811_v9, %v749_v6  ;;  %v1013_v12 = vpop.f32.mrb[28].mxu0  ;;  %v679_v13 = vadd.f32 %v1010_v56, %v678_v8  ;;  %v1311_v15 = vpop.f32.mrb[28].mxu1  ;;  %v756_v56 = vmul.f32 %v1261_v47, %v1261_v47 }
 0x154   :  { %v510_v17 = vpop.f32.mrb[29].mxu0  ;;  %v1313_v18 = vpop.f32.mrb[29].mxu1  ;;  %v753_v37 = vmul.f32 %v1013_v12, %v1013_v12 }
 0x155   :  { %v680_v19 = vadd.f32 %v679_v13, %v510_v17  ;;  %v751_v22 = vmul.f32 %v510_v17, %v510_v17  ;;  %v813_v25 = vadd.f32 %v812_v11, %v750_v10  ;;  %v1014_v26 = vpop.f32.mrb[30].mxu0  ;;  %v1315_v27 = vpop.f32.mrb[30].mxu1 }
 0x156   :  { %v513_v28 = vpop.f32.mrb[31].mxu0  ;;  %v1317_v30 = vpop.f32.mrb[31].mxu1  ;;  %v754_v40 = vmul.f32 %v1014_v26, %v1014_v26 }
 0x157   :  { %v814_v32 = vadd.f32 %v813_v25, %v751_v22  ;;  %v681_v33 = vadd.f32 %v680_v19, %v513_v28  ;;  %v752_v35 = vmul.f32 %v513_v28, %v513_v28 }
 0x159   :  { %v682_v38 = vadd.f32 %v1013_v12, %v681_v33  ;;  %v815_v39 = vadd.f32 %v814_v32, %v752_v35  ;;  %v760_v12 = vmul.f32 %v1269_v3, %v1269_v3  ;;  %v764_v32 = vmul.f32 %v1277_v23, %v1277_v23 }
 0x15b   :  { %v816_v44 = vadd.f32 %v815_v39, %v753_v37  ;;  %v683_v48 = vadd.f32 %v1014_v26, %v682_v38 }
 0x15d   :  { %v684_v51 = vadd.f32 %v683_v48, %v1257_v43  ;;  %v817_v53 = vadd.f32 %v816_v44, %v754_v40  ;;  %v759_v43 = vmul.f32 %v1265_v60, %v1265_v60  ;;  %v768_v48 = vmul.f32 %v1285_v46, %v1285_v46 }
 0x15f   :  { %v818_v54 = vadd.f32 %v817_v53, %v755_v49  ;;  %v685_v55 = vadd.f32 %v684_v51, %v1261_v47 }
 0x161   :  { %v686_v0 = vadd.f32 %v1255_v41, %v685_v55  ;;  %v819_v2 = vadd.f32 %v818_v54, %v756_v56  ;;  %v761_v41 = vmul.f32 %v1263_v58, %v1263_v58 }
 0x163   :  { %v820_v6 = vadd.f32 %v819_v2, %v757_v61  ;;  %v687_v8 = vadd.f32 %v1259_v45, %v686_v0  ;;  %v762_v45 = vmul.f32 %v1267_v1, %v1267_v1  ;;  %v772_v0 = vmul.f32 %v1293_v7, %v1293_v7 }
 0x165   :  { %v688_v9 = vadd.f32 %v687_v8, %v1265_v60  ;;  %v821_v10 = vadd.f32 %v820_v6, %v758_v4  ;;  %v763_v60 = vmul.f32 %v1273_v16, %v1273_v16 }
 0x167   :  { %v822_v11 = vadd.f32 %v821_v10, %v759_v43  ;;  %v689_v47 = vadd.f32 %v688_v9, %v1269_v3 }
 0x169   :  { %v690_v13 = vadd.f32 %v1263_v58, %v689_v47  ;;  %v823_v17 = vadd.f32 %v822_v11, %v760_v12  ;;  %v765_v58 = vmul.f32 %v1271_v14, %v1271_v14  ;;  %v776_v11 = vmul.f32 %v1301_v31, %v1301_v31 }
 0x16b   :  { %v824_v19 = vadd.f32 %v823_v17, %v761_v41  ;;  %v691_v22 = vadd.f32 %v1267_v1, %v690_v13  ;;  %v766_v1 = vmul.f32 %v1275_v21, %v1275_v21 }
 0x16d   :  { %v692_v25 = vadd.f32 %v691_v22, %v1273_v16  ;;  %v825_v26 = vadd.f32 %v824_v19, %v762_v45  ;;  %v767_v16 = vmul.f32 %v1281_v36, %v1281_v36  ;;  %v780_v22 = vmul.f32 %v1309_v63, %v1309_v63 }
 0x16f   :  { %v826_v28 = vadd.f32 %v825_v26, %v763_v60  ;;  %v693_v3 = vadd.f32 %v692_v25, %v1277_v23 }
 0x171   :  { %v694_v33 = vadd.f32 %v1271_v14, %v693_v3  ;;  %v827_v35 = vadd.f32 %v826_v28, %v764_v32  ;;  %v769_v14 = vmul.f32 %v1279_v34, %v1279_v34 }
 0x173   :  { %v828_v37 = vadd.f32 %v827_v35, %v765_v58  ;;  %v695_v38 = vadd.f32 %v1275_v21, %v694_v33  ;;  %v770_v21 = vmul.f32 %v1283_v42, %v1283_v42  ;;  %v784_v33 = vmul.f32 %v1317_v30, %v1317_v30 }
 0x175   :  { %v696_v39 = vadd.f32 %v695_v38, %v1281_v36  ;;  %v829_v40 = vadd.f32 %v828_v37, %v766_v1  ;;  %v771_v36 = vmul.f32 %v1289_v62, %v1289_v62 }
 0x177   :  { %v830_v44 = vadd.f32 %v829_v40, %v767_v16  ;;  %v697_v23 = vadd.f32 %v696_v39, %v1285_v46 }
 0x179   :  { %v698_v49 = vadd.f32 %v1279_v34, %v697_v23  ;;  %v831_v51 = vadd.f32 %v830_v44, %v768_v48  ;;  %v773_v34 = vmul.f32 %v1287_v59, %v1287_v59 }
 0x17b   :  { %v832_v53 = vadd.f32 %v831_v51, %v769_v14  ;;  %v699_v54 = vadd.f32 %v1283_v42, %v698_v49  ;;  %v774_v42 = vmul.f32 %v1291_v5, %v1291_v5 }
 0x17d   :  { %v700_v55 = vadd.f32 %v699_v54, %v1289_v62  ;;  %v833_v56 = vadd.f32 %v832_v53, %v770_v21  ;;  %v775_v62 = vmul.f32 %v1297_v24, %v1297_v24 }
 0x17f   :  { %v834_v61 = vadd.f32 %v833_v56, %v771_v36  ;;  %v701_v46 = vadd.f32 %v700_v55, %v1293_v7 }
 0x181   :  { %v702_v2 = vadd.f32 %v1287_v59, %v701_v46  ;;  %v835_v4 = vadd.f32 %v834_v61, %v772_v0  ;;  %v777_v59 = vmul.f32 %v1295_v20, %v1295_v20 }
 0x183   :  { %v836_v6 = vadd.f32 %v835_v4, %v773_v34  ;;  %v703_v8 = vadd.f32 %v1291_v5, %v702_v2  ;;  %v778_v5 = vmul.f32 %v1299_v29, %v1299_v29 }
 0x185   :  { %v704_v43 = vadd.f32 %v703_v8, %v1297_v24  ;;  %v837_v9 = vadd.f32 %v836_v6, %v774_v42  ;;  %v779_v24 = vmul.f32 %v1305_v52, %v1305_v52 }
 0x187   :  { %v838_v10 = vadd.f32 %v837_v9, %v775_v62  ;;  %v705_v7 = vadd.f32 %v704_v43, %v1301_v31 }
 0x189   :  { %v706_v47 = vadd.f32 %v1295_v20, %v705_v7  ;;  %v839_v12 = vadd.f32 %v838_v10, %v776_v11  ;;  %v781_v20 = vmul.f32 %v1303_v50, %v1303_v50 }
 0x18b   :  { %v840_v41 = vadd.f32 %v839_v12, %v777_v59  ;;  %v707_v13 = vadd.f32 %v1299_v29, %v706_v47  ;;  %v782_v29 = vmul.f32 %v1307_v57, %v1307_v57 }
 0x18d   :  { %v708_v17 = vadd.f32 %v707_v13, %v1305_v52  ;;  %v841_v45 = vadd.f32 %v840_v41, %v778_v5  ;;  %v783_v52 = vmul.f32 %v1313_v18, %v1313_v18 }
 0x18f   :  { %v842_v19 = vadd.f32 %v841_v45, %v779_v24  ;;  %v709_v31 = vadd.f32 %v708_v17, %v1309_v63 }
 0x191   :  { %v710_v60 = vadd.f32 %v1303_v50, %v709_v31  ;;  %v843_v25 = vadd.f32 %v842_v19, %v780_v22  ;;  %v785_v50 = vmul.f32 %v1311_v15, %v1311_v15 }
 0x193   :  { %v844_v26 = vadd.f32 %v843_v25, %v781_v20  ;;  %v711_v28 = vadd.f32 %v1307_v57, %v710_v60  ;;  %v786_v57 = vmul.f32 %v1315_v27, %v1315_v27 }
 0x195   :  { %v712_v3 = vadd.f32 %v711_v28, %v1313_v18  ;;  %v845_v32 = vadd.f32 %v844_v26, %v782_v29 }
 0x197   :  { %v846_v58 = vadd.f32 %v845_v32, %v783_v52  ;;  %v713_v63 = vadd.f32 %v712_v3, %v1317_v30 }
 0x199   :  { %v714_v35 = vadd.f32 %v1311_v15, %v713_v63  ;;  %v847_v1 = vadd.f32 %v846_v58, %v784_v33 }
 0x19b   :  { %v715_v37 = vadd.f32 %v1315_v27, %v714_v35  ;;  %v848_v38 = vadd.f32 %v847_v1, %v785_v50 }
 0x19d   :  { %v716_v18 = vrot.slane %v715_v37, 4  ;;  %v849_v16 = vadd.f32 %v848_v38, %v786_v57 }
 0x19f   :  { %v717_v39 = vadd.f32 %v716_v18, %v715_v37  ;;  %v850_v40 = vrot.slane %v849_v16, 4 }
 0x1a1   :  { %v718_v44 = vrot.slane %v717_v39, 2  ;;  %v851_v23 = vadd.f32 %v850_v40, %v849_v16 }
 0x1a3   :  { %v719_v48 = vadd.f32 %v718_v44, %v717_v39  ;;  %v852_v30 = vrot.slane %v851_v23, 2 }
 0x1a5   :  { %v720_v14 = vrot.slane %v719_v48, 1  ;;  %v853_v49 = vadd.f32 %v852_v30, %v851_v23 }
 0x1a7   :  { %v721_v15 = vadd.f32 %v720_v14, %v719_v48  ;;  %v854_v51 = vrot.slane %v853_v49, 1 }
 0x1a9   :  { %722 = vst [vmem:[#allocation7] sm:$0x1] %v721_v15  ;;  %v855_v27 = vadd.f32 %v854_v51, %v853_v49 }
 0x1aa   :  { %1164 = shalt.err (!%p1161_p6)
}
 0x1ab   :  { %s1165_s17 = scalar_lea.hbm %s1449_s2, 16 }
 0x1ac   :  { %p1166_p7 = scmp.ne.s32.totalorder %s1449_s2, %s1165_s17  ;;  %p1169_p8 = scmp.lt.u32.totalorder %s1165_s17, %s1449_s2 }
 0x1ae   :  { %p1171_p9 = pnand %p1169_p8, %p1166_p7 }
 0x1b0   :  { %1174 = shalt.err (!%p1171_p9)
}
 0x1b1   :  { %866 = dma.vmem_to_hbm [thread:$0]  %s864_s10, 16, %s1449_s2, [#allocation4]   ;;  %856 = vst [vmem:[#allocation8] sm:$0x1] %v855_v27 }
 0x1b2   :  { %s1175_s24 = scalar_lea.vmem %s1415_s12, 16  ;;  %s1179_s25 = scalar_lea.vmem %s1415_s12, 32 }
 0x1b3   :  { %p1176_p10 = scmp.ne.s32.totalorder %s1415_s12, %s1175_s24  ;;  %p1180_p11 = scmp.lt.s32.totalorder %s1415_s12, %s1415_s12 }
 0x1b4   :  { %p1181_p12 = scmp.lt.s32.totalorder %s1179_s25, %s1175_s24 }
 0x1b6   :  { %p1182_p13 = por %p1181_p12, %p1180_p11 }
 0x1b8   :  { %p1183_p0 = pnand %p1182_p13, %p1176_p10 }
 0x1ba   :  { %1186 = shalt.err (!%p1183_p0)
}
 0x1bb   :  { %s1187_s28 = scalar_lea.hbm %s1450_s3, 16 }
 0x1bc   :  { %p1188_p1 = scmp.ne.s32.totalorder %s1450_s3, %s1187_s28  ;;  %p1191_p2 = scmp.lt.u32.totalorder %s1187_s28, %s1450_s3 }
 0x1be   :  { %p1193_p3 = pnand %p1191_p2, %p1188_p1 }
 0x1c0   :  { %1196 = shalt.err (!%p1193_p3)
}
 0x1c1   :  { %876 = dma.vmem_to_hbm [thread:$0]  %s1415_s12, 16, %s1450_s3, [#allocation9]  }
 0x1c2   :  { %1201 = dma.done.wait [#allocation4], 16  }
 0x1c3   :  { %1202 = vsyncadd [#allocation4], 4294967280 }
 0x1c4   :  { %1203 = dma.done.wait [#allocation9], 16  }
 0x1c5   :  { %1204 = vsyncadd [#allocation9], 4294967280 }
 0x1c6   :  { %883 = vsyncpa [#allocation3], 1 }
 0x1c7   :  { %884 = vsyncpa [#allocation6], 1 }
 0x1c8   :  { %885 = vsyncpa [#allocation4], 1 }
 0x1c9   :  { %886 = vsyncpa [#allocation9], 1 }

</bundles_post_ra>
